<compile_context>
chip_gen: v6e
topology: v6e:2x2x1
jax: 0.10.0
libtpu: 0.0.40
codegen_flags: <defaults>
</compile_context>

<pallas_src>
import jax
import jax.numpy as jnp
from jax.experimental import pallas as pl
from jax.experimental.pallas import tpu as pltpu

TILE = 128  # row / reduction tile: MXU- and lane-aligned


def _round_up(x, m):
    return (x + m - 1) // m * m


# --------------------- stage 1: XW = X @ W_gc (padded) ----------------------
def xw_kernel(x_ref, w_ref, out_ref):
    out_ref[...] = jnp.dot(
        x_ref[...], w_ref[...], preferred_element_type=jnp.float32
    ).astype(out_ref.dtype)


def compute_xw(x_bf, w_gc_pad_bf, h_pad):
    n_pad, nfeat = x_bf.shape
    return pl.pallas_call(
        xw_kernel,
        out_shape=jax.ShapeDtypeStruct((n_pad, h_pad), jnp.bfloat16),
        grid=(n_pad // TILE,),
        in_specs=[
            pl.BlockSpec((TILE, nfeat), lambda i: (i, 0)),
            pl.BlockSpec((nfeat, h_pad), lambda i: (0, 0)),
        ],
        out_specs=pl.BlockSpec((TILE, h_pad), lambda i: (i, 0)),
        compiler_params=pltpu.CompilerParams(
            dimension_semantics=("parallel",),
        ),
    )(x_bf, w_gc_pad_bf)


# ------ stage 2: out = (A @ XW + b_gc) @ W_fc + b_fc, tiled over (i, k) ------
def gcn_agg_kernel(a_ref, xw_ref, bgc_ref, wfc_ref, bfc_ref, out_ref, acc_ref):
    k = pl.program_id(1)

    @pl.when(k == 0)
    def _():
        acc_ref[...] = jnp.zeros_like(acc_ref)

    # bf16 x bf16 -> f32 accumulation on the MXU (dominant, mem-bound matmul).
    acc_ref[...] += jnp.dot(
        a_ref[...], xw_ref[...], preferred_element_type=jnp.float32
    )

    @pl.when(k == pl.num_programs(1) - 1)
    def _():
        # Finalize only: bias add + the tiny fc matmul, lane-dense output.
        h = acc_ref[...] + bgc_ref[...]
        out = jnp.dot(
            h.astype(jnp.bfloat16), wfc_ref[...],
            preferred_element_type=jnp.float32,
        ) + bfc_ref[...]
        out_ref[...] = out.astype(out_ref.dtype)


def gcn_aggregate(a_bf, xw_bf, b_gc_pad, w_fc_pad_bf, b_fc_pad, h_pad, c_pad):
    n_pad = a_bf.shape[0]
    grid = (n_pad // TILE, n_pad // TILE)  # (rows, reduction) — reduction last
    return pl.pallas_call(
        gcn_agg_kernel,
        out_shape=jax.ShapeDtypeStruct((n_pad, c_pad), jnp.float32),
        grid=grid,
        in_specs=[
            pl.BlockSpec((TILE, TILE), lambda i, k: (i, k)),    # A_norm tile
            pl.BlockSpec((TILE, h_pad), lambda i, k: (k, 0)),   # XW tile
            pl.BlockSpec((1, h_pad), lambda i, k: (0, 0)),      # b_gc (resident)
            pl.BlockSpec((h_pad, c_pad), lambda i, k: (0, 0)),  # W_fc (resident)
            pl.BlockSpec((1, c_pad), lambda i, k: (0, 0)),      # b_fc (resident)
        ],
        out_specs=pl.BlockSpec((TILE, c_pad), lambda i, k: (i, 0)),
        scratch_shapes=[pltpu.VMEM((TILE, h_pad), jnp.float32)],
        compiler_params=pltpu.CompilerParams(
            dimension_semantics=("parallel", "arbitrary"),
            vmem_limit_bytes=32 * 1024 * 1024,
        ),
    )(a_bf, xw_bf, b_gc_pad, w_fc_pad_bf, b_fc_pad)


# ------------------------------- forward wrapper -----------------------------
def gcn_forward(a_norm, x, w_gc, b_gc, w_fc, b_fc):
    N, nfeat = x.shape
    nhid = w_gc.shape[1]
    nclass = w_fc.shape[1]

    n_pad = _round_up(N, TILE)
    h_pad = _round_up(nhid, 128)   # lane-dense hidden dim
    c_pad = _round_up(nclass, 128)  # lane-dense output dim

    bf16 = jnp.bfloat16
    a_bf = jnp.pad(a_norm, ((0, n_pad - N), (0, n_pad - N))).astype(bf16)
    x_bf = jnp.pad(x, ((0, n_pad - N), (0, 0))).astype(bf16)
    wgc_bf = jnp.pad(w_gc, ((0, 0), (0, h_pad - nhid))).astype(bf16)
    bgc_p = jnp.pad(b_gc, ((0, 0), (0, h_pad - nhid))).astype(jnp.float32)
    wfc_bf = jnp.pad(w_fc, ((0, h_pad - nhid), (0, c_pad - nclass))).astype(bf16)
    bfc_p = jnp.pad(b_fc, ((0, 0), (0, c_pad - nclass))).astype(jnp.float32)

    xw_bf = compute_xw(x_bf, wgc_bf, h_pad)
    out_pad = gcn_aggregate(a_bf, xw_bf, bgc_p, wfc_bf, bfc_p, h_pad, c_pad)
    return out_pad[:N, :nclass]


# ------------------------------- glue / setup --------------------------------
def build_normalized_adjacency(edge_index, num_nodes):
    """A_norm = D^{-1/2} (A + I) D^{-1/2}, matching PyG GCNConv defaults.

    Note: assumes edge_index has no self-loops (duplicates are deduplicated by
    .set); matches gcn_norm(add_self_loops=True) for such graphs.
    """
    src, dst = edge_index
    a = jnp.zeros((num_nodes, num_nodes), jnp.float32)
    a = a.at[src, dst].set(1.0)
    a_hat = a + jnp.eye(num_nodes, dtype=jnp.float32)
    deg = jnp.sum(a_hat, axis=1)
    d_inv_sqrt = jnp.where(deg > 0, 1.0 / jnp.sqrt(deg), 0.0)
    return d_inv_sqrt[:, None] * a_hat * d_inv_sqrt[None, :]


def glorot_uniform(key, shape):
    fan_in, fan_out = shape[0], shape[1]
    limit = jnp.sqrt(6.0 / (fan_in + fan_out))
    return jax.random.uniform(key, shape, jnp.float32, -limit, limit)


def init_params(key, nfeat, nhid, nclass):
    k1, k2 = jax.random.split(key)
    # GCNConv weight: glorot init, bias zero (PyG default init).
    w_gc = glorot_uniform(k1, (nfeat, nhid))
    b_gc = jnp.zeros((1, nhid), jnp.float32)
    # nn.Linear: xavier_uniform_ weight, bias = 0; stored as [nhid, nclass]
    # so the kernel does h @ W (same distribution as the [nclass, nhid]^T).
    w_fc = glorot_uniform(k2, (nhid, nclass))
    b_fc = jnp.zeros((1, nclass), jnp.float32)
    return w_gc, b_gc, w_fc, b_fc


if __name__ == "__main__":
    N, nfeat, nhid, nclass = 256, 16, 32, 4

    key = jax.random.PRNGKey(0)
    k_x, k_p = jax.random.split(key)

    # Deterministic node features.
    x = jax.random.normal(k_x, (N, nfeat), jnp.float32)

    # Deterministic small graph: bidirectional ring.
    idx = jnp.arange(N)
    src = jnp.concatenate([idx, (idx + 1) % N])
    dst = jnp.concatenate([(idx + 1) % N, idx])
    edge_index = jnp.stack([src, dst])  # [2, 2N] like PyG edge_index

    a_norm = build_normalized_adjacency(edge_index, N)
    w_gc, b_gc, w_fc, b_fc = init_params(k_p, nfeat, nhid, nclass)

    out = gcn_forward(a_norm, x, w_gc, b_gc, w_fc, b_fc)
    out = jax.block_until_ready(out)

    # Reference reproducing the kernel's intermediate bf16 roundings with
    # full-precision f32 matmuls (accumulation-order differences only).
    f32 = jnp.float32
    hi = jax.lax.Precision.HIGHEST
    bf = lambda a: a.astype(jnp.bfloat16).astype(f32)
    xw_ref = jnp.dot(bf(x), bf(w_gc), precision=hi)
    h_ref = jnp.dot(bf(a_norm), bf(xw_ref), precision=hi) + b_gc
    ref = jnp.dot(bf(h_ref), bf(w_fc), precision=hi) + b_fc

    assert out.shape == (N, nclass)
    assert jnp.allclose(out, ref, atol=1e-2, rtol=1e-2)

    # TODO(synk): at large N, replace the dense A_norm @ XW with a
    # PrefetchScalarGridSpec gather-based SpMM over neighbor lists.

    print("KERNEL_OK")
</pallas_src>

<mosaic_0001>
module attributes {stable_mosaic.version = 11 : i64} {
  func.func @xw_kernel(%arg0: i32, %arg1: memref<128x16xbf16, #tpu.memory_space<vmem>>, %arg2: memref<16x128xbf16, #tpu.memory_space<vmem>>, %arg3: memref<128x128xbf16, #tpu.memory_space<vmem>>) attributes {dimension_semantics = [#tpu.dimension_semantics<parallel>], iteration_bounds = array<i64: 2>, scalar_prefetch = 0 : i64, scratch_operands = 0 : i64, tpu.core_type = #tpu.core_type<tc>, window_params = [{transform_indices = @transform_0, window_bounds = array<i64: 128, 16>}, {pipeline_mode = #tpu.pipeline_mode<synchronous>, transform_indices = @transform_1, window_bounds = array<i64: 16, 128>}, {transform_indices = @transform_2, window_bounds = array<i64: 128, 128>}]} {
    %c0 = arith.constant 0 : index
    %c0_0 = arith.constant 0 : index
    %0 = vector.load %arg1[%c0, %c0_0] : memref<128x16xbf16, #tpu.memory_space<vmem>>, vector<128x16xbf16>
    %c0_1 = arith.constant 0 : index
    %c0_2 = arith.constant 0 : index
    %1 = vector.load %arg2[%c0_1, %c0_2] : memref<16x128xbf16, #tpu.memory_space<vmem>>, vector<16x128xbf16>
    %cst = arith.constant dense<0.000000e+00> : vector<128x128xf32>
    %2 = tpu.matmul %0, %1, %cst {dimension_numbers = #tpu.dot_dimension_numbers<[1], [0], [0], [1], [0, 0, 1, 1], [], []>} : vector<128x16xbf16>, vector<16x128xbf16>, vector<128x128xf32> -> vector<128x128xf32>
    %3 = arith.truncf %2 : vector<128x128xf32> to vector<128x128xbf16>
    %c0_3 = arith.constant 0 : index
    %c0_4 = arith.constant 0 : index
    %4 = vector.load %arg3[%c0_3, %c0_4] : memref<128x128xbf16, #tpu.memory_space<vmem>>, vector<128x128xbf16>
    tpu.vector_store %arg3[%c0_3, %c0_4], %3 {strides = array<i32>} : memref<128x128xbf16, #tpu.memory_space<vmem>>, vector<128x128xbf16>,
    return
  }
  func.func @transform_0(%arg0: i32) -> (i32, i32) {
    %c0_i32 = arith.constant 0 : i32
    %c0_i32_0 = arith.constant 0 : i32
    return %arg0, %c0_i32 : i32, i32
  }
  func.func @transform_1(%arg0: i32) -> (i32, i32) {
    %c0_i32 = arith.constant 0 : i32
    %c0_i32_0 = arith.constant 0 : i32
    %c0_i32_1 = arith.constant 0 : i32
    return %c0_i32, %c0_i32_0 : i32, i32
  }
  func.func @transform_2(%arg0: i32) -> (i32, i32) {
    %c0_i32 = arith.constant 0 : i32
    %c0_i32_0 = arith.constant 0 : i32
    return %arg0, %c0_i32 : i32, i32
  }
}

</mosaic_0001>

<bundles_post_ra>
// kernel: tpu_custom_call.1
= control target key start
LH: loop header
LB: loop body
LE: loop exit
PB: predicated region body
PF: predicated region fallthrough
CT: control target
= control target key end

     0   :  { %7 = vsyncpa [#allocation3], 0  ;;  %s872_s0 = inlined_call_operand.vmem [shape: bf16[256,16], index: 0, kind: input, shape index: {}]   ;;  %s873_s1 = inlined_call_operand.vmem [shape: bf16[16,128], index: 1, kind: input, shape index: {}]   ;;  %s874_s2 = inlined_call_operand.hbm [shape: bf16[256,128], index: 2, kind: output, shape index: {}]  }
   0x1   :  { %9 = vsyncpa [#allocation3 + $0x1], 0  ;;  %s756_s9 = smov 0   ;;  %s758_s10 = smov 0  }
   0x2   :  { %s760_s11 = smov 0   ;;  %s762_s12 = smov 0  }
   0x3 LB: > { %s777_s13 = sadd.s32 4294967295, %s736_s12   ;;  %s488_s14 = sadd.s32 4294967294, %s736_s12   ;;  %s736_s12 = sphi %s762_s12, %s880_s12   ;;  %s732_s11 = sphi %s760_s11, %s879_s11   ;;  %s728_s10 = sphi %s758_s10, %s878_s10   ;;  %s724_s9 = sphi %s756_s9, %s877_s9  }
   0x4   : > { %s781_s15 = sadd.s32 1, %s736_s12   ;;  %s69_s16 = sadd.s32 1, %s732_s11 }
   0x5   : > { %s66_s17 = ssub.s32 %s736_s12, %s781_s15  ;;  %p79_p0 = scmp.ne.s32.totalorder %s732_s11, %s728_s10 }
   0x6   : > { %p67_p1 = scmp.eq.s32.totalorder %s66_s17, 0  ;;  %p80_p2 = scmp.eq.s32.totalorder %s777_s13, 1 }
   0x7   : > { %p85_p3 = scmp.ne.s32.totalorder %s728_s10, %s724_s9  ;;  %p86_p4 = scmp.eq.s32.totalorder %s488_s14, 1 }
   0x8   : > { %s792_s18 = scalar_select %p67_p1, %s732_s11, %s69_s16  }
   0x9   : > { %p794_p5 = por %p80_p2, %p79_p0  ;;  %p798_p6 = por %p86_p4, %p85_p3 }
   0xa   : > { %p491_p7 = scmp.ge.s32.totalorder %s736_s12, 1  ;;  %p116_p8 = scmp.lt.s32.totalorder %s736_s12, 3 }
   0xc   : > { %p117_p9 = pnand %p491_p7, %p116_p8 }
   0xd   : > { %s493_s23 = sshll.u32 (!%p117_p9), %s777_s13, 4  ;;  %s135_s28 = sand.u32 (!%p117_p9), 1, %s728_s10  }
   0xe   : > { %120 = sbr.rel (%p117_p9) target bundleno = 248 (0xf8), region = 28  ;;  %p139_p10 = scmp.lt.s32.totalorder (!%p117_p9), %s493_s23, 31 }
   0xf   : > { %s492_s29 = sshll.u32 (!%p117_p9), %s135_s28, 6  ;;  %s549_s3 = sshll.u32 (!%p117_p9), %s777_s13, 10 }
  0x10   : > { %s137_s30 = scalar_lea.vmem (!%p117_p9), [#allocation2], %s492_s29  ;;  %s826_s7 = scalar_lea.hbm (!%p117_p9), %s874_s2, %s549_s3 }
  0x11   : > { %s426_s4 = sshll.u32 (!%p117_p9), %s137_s30, 4  ;;  %s832_s8 = scalar_lea.sflag (!%p117_p9), [#allocation3], %s135_s28  ;;  %s828_s4 = int_to_ptr.vmem [resolvable:$true] %s426_s4 }
  0x12   : > { %s676_s13 = scalar_lea.vmem (!%p117_p9), %s828_s4, 1024  ;;  %s738_s14 = smov (!%p117_p9), [#allocation2]  }
  0x13   : > { %v667_v0 = vld [vmem:[%s873_s1] sm:$0xff]   ;;  %s882_s23 = smov (!%p139_p10, %s493_s23), 31  ;;  %vm210_vm0 = vcmask 130048   ;;  %p677_p11 = scmp.ne.s32.totalorder %s828_s4, %s676_s13 }
  0x14   : > { %606 = vmatprep.subr.bf16.mxu0 %v667_v0  ;;  %624 = vmatprep.subr.bf16.mxu1 %v667_v0  ;;  %s494_s24 = sshll.u32 %s882_s23, 2  ;;  %s680_s16 = sshll.u32 %s738_s14, 4  ;;  %s681_s16 = int_to_ptr.vmem [resolvable:$false] %s680_s16 }
  0x15   : > { %607 = vmatpush3.bf16.msra.mxu0 %v667_v0  ;;  %625 = vmatpush3.bf16.msra.mxu1 %v667_v0  ;;  %s142_s27 = scalar_lea.vmem %s872_s0, %s494_s24  ;;  %p678_p12 = pnand %p677_p11, %p794_p5 }
  0x16   : > { %v668_v1 = vld [vmem:[%s142_s27] sm:$0xff]   ;;  %v670_v3 = vld [vmem:[%s142_s27 + $0x8] sm:$0xff]   ;;  %v672_v5 = vld [vmem:[%s142_s27 + $0x10] sm:$0xff]   ;;  %s682_s17 = scalar_lea.vmem %s681_s16, 2048  ;;  %p683_p0 = scmp.lt.s32.totalorder %s828_s4, %s681_s16 }
  0x17   : > { %v669_v2 = vld [vmem:[%s142_s27 + $0x20] sm:$0xff]   ;;  %608 = vmatprep.mubr.msk.bf16.mxu0 %vm210_vm0, %v668_v1  ;;  %v671_v4 = vld [vmem:[%s142_s27 + $0x28] sm:$0xff]   ;;  %v673_v6 = vld [vmem:[%s142_s27 + $0x30] sm:$0xff]   ;;  %p679_p13 = pneg %p678_p12  ;;  %p684_p1 = scmp.lt.s32.totalorder %s682_s17, %s676_s13 }
  0x18   : > { %616 = vmatprep.mubr.msk.bf16.mxu1 %vm210_vm0, %v669_v2  ;;  %609 = vmatmul.mubr.msk.bf16.vlgmr.msra.gmra.mxu0 %vm210_vm0, %v670_v3  ;;  %v674_v7 = vld [vmem:[%s142_s27 + $0x18] sm:$0xff]  }
  0x19   : > { %617 = vmatmul.mubr.msk.bf16.vlgmr.msra.gmra.mxu1 %vm210_vm0, %v671_v4  ;;  %612 = vmatprep.mubr.msk.bf16.mxu0 %vm210_vm0, %v672_v5  ;;  %v675_v8 = vld [vmem:[%s142_s27 + $0x38] sm:$0xff]   ;;  %p685_p2 = por %p684_p1, %p683_p0 }
  0x1a   : > { %620 = vmatprep.mubr.msk.bf16.mxu1 %vm210_vm0, %v673_v6 }
  0x1b   : > { %p686_p3 = pnand %p685_p2, %p679_p13 }
  0x20   : > { %613 = vmatmul.mubr.msk.bf16.gmra.mxu0 %vm210_vm0, %v674_v7 }
  0x21   : > { %621 = vmatmul.mubr.msk.bf16.gmra.mxu1 %vm210_vm0, %v675_v8 }
  0xd8   : > { %v610_v9 = vpop.f32.mrf.mxu0 }
  0xd9   : > { %v618_v10 = vpop.f32.mrf.mxu1 }
  0xda   : > { %v269_v11 = vpop.f32.mrf.mxu0 }
  0xdb   : > { %v301_v12 = vpop.f32.mrf.mxu1 }
  0xdc   : > { %v611_v13 = vpop.f32.mrf.mxu0 }
  0xdd   : > { %v558_v14 = vpack.c.bf16 %v611_v13, %v610_v9  ;;  %v619_v15 = vpop.f32.mrf.mxu1 }
  0xde   : > { %v578_v16 = vpack.c.bf16 %v619_v15, %v618_v10  ;;  %v272_v17 = vpop.f32.mrf.mxu0 }
  0xdf   : > { %590 = vst [vmem:[%s137_s30 + $0x8] sm:$0xff] %v558_v14   ;;  %v553_v18 = vpack.c.bf16 %v272_v17, %v269_v11  ;;  %v304_v19 = vpop.f32.mrf.mxu1 }
  0xe0   : > { %594 = vst [vmem:[%s137_s30 + $0x28] sm:$0xff] %v578_v16   ;;  %v573_v20 = vpack.c.bf16 %v304_v19, %v301_v12  ;;  %v614_v21 = vpop.f32.mrf.mxu0 }
  0xe1   : > { %554 = vst [vmem:[%s137_s30] sm:$0xff] %v553_v18   ;;  %v622_v22 = vpop.f32.mrf.mxu1 }
  0xe2   : > { %593 = vst [vmem:[%s137_s30 + $0x20] sm:$0xff] %v573_v20   ;;  %v285_v23 = vpop.f32.mrf.mxu0 }
  0xe3   : > { %v317_v24 = vpop.f32.mrf.mxu1 }
  0xe4   : > { %v615_v25 = vpop.f32.mrf.mxu0 }
  0xe5   : > { %v568_v26 = vpack.c.bf16 %v615_v25, %v614_v21  ;;  %v623_v27 = vpop.f32.mrf.mxu1 }
  0xe6   : > { %v588_v28 = vpack.c.bf16 %v623_v27, %v622_v22  ;;  %v288_v29 = vpop.f32.mrf.mxu0 }
  0xe7   : > { %592 = vst [vmem:[%s137_s30 + $0x18] sm:$0xff] %v568_v26   ;;  %v563_v30 = vpack.c.bf16 %v288_v29, %v285_v23  ;;  %v320_v31 = vpop.f32.mrf.mxu1 }
  0xe8   : > { %596 = vst [vmem:[%s137_s30 + $0x38] sm:$0xff] %v588_v28   ;;  %v583_v32 = vpack.c.bf16 %v320_v31, %v317_v24 }
  0xe9   : > { %591 = vst [vmem:[%s137_s30 + $0x10] sm:$0xff] %v563_v30  }
  0xea   : > { %595 = vst [vmem:[%s137_s30 + $0x30] sm:$0xff] %v583_v32  }
  0xeb   : > { %689 = shalt.err (!%p686_p3)
}
  0xec   : > { %s690_s21 = scalar_lea.hbm %s826_s7, 1024  ;;  %s694_s24 = scalar_lea.hbm %s874_s2, 2048 }
  0xed   : > { %p691_p4 = scmp.ne.s32.totalorder %s826_s7, %s690_s21  ;;  %p695_p9 = scmp.lt.s32.totalorder %s826_s7, %s874_s2 }
  0xee   : > { %p696_p10 = scmp.lt.s32.totalorder %s694_s24, %s690_s21 }
  0xef   : > { %p692_p7 = pnand %p691_p4, %p794_p5 }
  0xf0   : > { %p697_p11 = por %p696_p10, %p695_p9 }
  0xf1   : > { %p693_p8 = pneg %p692_p7 }
  0xf3   : > { %p698_p12 = pnand %p697_p11, %p693_p8 }
  0xf5   : > { %701 = shalt.err (!%p698_p12)
}
  0xf6   : > { %s739_s27 = smov 64   ;;  %s740_s28 = smov 4  }
  0xf7   : > { %626 = dma.vmem_to_hbm [thread:$0]  (%p794_p5), %s828_s4, 1024, %s826_s7, %s832_s8, %s739_s27, %s739_s27, %s740_s28  }
  0xf8 PF: > { %p632_p13 = scmp.ge.s32.totalorder %s736_s12, 2  ;;  %s441_s29 = sand.u32 1, %s724_s9  }
  0xf9   : > { %s442_s30 = scalar_lea.sflag [#allocation3], %s441_s29 }
  0xfa   : > { %p629_p0 = pnand %p632_p13, %p798_p6 }
  0xfc   : > { %p630_p1 = pneg %p629_p0 }
  0xfe   : > { %719 = dma.done.wait (%p630_p1), %s442_s30, 1024  }
  0xff   : > { %721 = vsyncadd (%p630_p1), %s442_s30, 4294966272  ;;  %p12_p2 = scmp.ge.s32.totalorder %s781_s15, 4   ;;  %s877_s9 = smov %s728_s10 }
 0x100   : > { %s878_s10 = smov %s732_s11  ;;  %s879_s11 = smov %s792_s18 }
 0x101   : > { %s880_s12 = smov %s781_s15  ;;  %14 = sbr.rel (!%p12_p2) target bundleno = 3 (0x3), region = 63 }
 0x106   :  { %447 = vsyncpa [#allocation3], 1 }
 0x107   :  { %449 = vsyncpa [#allocation3 + $0x1], 1 }

</bundles_post_ra>
